<compile_context>
chip_gen: v5e
topology: v5e:2x2
jax: 0.10.0
libtpu: 0.0.40
codegen_flags: <defaults>
</compile_context>

<pallas_src>
import jax
import jax.numpy as jnp
from jax import lax
from jax.experimental import pallas as pl
from jax.experimental.pallas import tpu as pltpu


# ------------------------------ kernel ---------------------------------------
def attention_kernel(q_ref, c_ref, w_ref, out_ref, attnw_ref):
    # q_ref:  (B, S, H)   query
    # c_ref:  (B, T, H)   context
    # w_ref:  (3, H, H)   packed PyTorch-layout weights:
    #           w_ref[0] = linear_in.weight           (qp   = q   @ w0^T)
    #           w_ref[1] = linear_out.weight[:, :H]   (out += mix @ w1^T)
    #           w_ref[2] = linear_out.weight[:, H:]   (out += qp  @ w2^T)
    q = q_ref[...]
    ctx = c_ref[...]

    # contract last dim of x with axis 1 of W  ==  x @ W^T  (PyTorch Linear)
    dn = (((2,), (1,)), ((), ()))

    # general-attention projection of the query: (B, S, H) -> (B, S, H)
    qp = lax.dot_general(q, w_ref[0], dn, preferred_element_type=jnp.float32)

    # attention scores: bmm(qp, ctx^T) -> (B, S, T)
    scores = jnp.einsum('bsh,bth->bst', qp, ctx,
                        preferred_element_type=jnp.float32)

    # numerically stable softmax over the context axis
    m = jnp.max(scores, axis=-1, keepdims=True)
    e = jnp.exp(scores - m)
    denom = jnp.sum(e, axis=-1, keepdims=True)
    probs = e * pl.reciprocal(denom, approx=False)   # exact; preserves 1e-6 tol
    attnw_ref[...] = probs

    # mix = bmm(weights, context) -> (B, S, H)
    mix = jnp.einsum('bst,bth->bsh', probs, ctx,
                     preferred_element_type=jnp.float32)

    # linear_out(cat(mix, qp)) == mix @ W_out[:, :H]^T + qp @ W_out[:, H:]^T
    out = jnp.tanh(
        lax.dot_general(mix, w_ref[1], dn, preferred_element_type=jnp.float32)
        + lax.dot_general(qp, w_ref[2], dn, preferred_element_type=jnp.float32))
    out_ref[...] = out


# --------------------------- one-time weight prep ------------------------------
def prepare_weights(w_lin_in, w_lin_out):
    """Pack PyTorch-layout weights into one (3, H, H) operand.

    Called ONCE at setup time (outside the jitted hot path); weights are
    constants, so no per-call transpose/slice ops remain in the forward pass.
    """
    H = w_lin_in.shape[0]
    return jnp.stack([w_lin_in, w_lin_out[:, :H], w_lin_out[:, H:]], axis=0)


# ------------------------------ wrapper ---------------------------------------
def attention(query, context, w_packed):
    """General attention forward pass.

    query:    (B, S, H) float32
    context:  (B, T, H) float32
    w_packed: (3, H, H) float32 from prepare_weights()
    returns (output (B, S, H), attention_weights (B, S, T))
    """
    B, S, H = query.shape
    T = context.shape[1]
    f32 = 4

    # --- VMEM residency guard (single-block design). -------------------------
    # inputs + outputs + main intermediates (scores/exp + qp/mix), f32 bytes.
    est_vmem = f32 * (B * S * H + B * T * H + 3 * H * H       # inputs
                      + B * S * H + B * S * T                 # outputs
                      + 2 * B * S * T + 3 * B * S * H)        # temporaries
    if est_vmem > 16 * (1 << 20):
        # TODO(synk): switch to a T-tiled online-softmax (flash-style) grid
        # before approaching v7x's 64 MiB physical / 32 MiB scoped VMEM.
        raise ValueError(
            f"attention: single-block VMEM estimate {est_vmem} B exceeds guard; "
            "tile over T/B instead.")

    # --- advisory cost estimate so XLA can schedule around this call. --------
    flops = (2 * B * S * H * H          # qp projection
             + 2 * B * S * T * H        # scores
             + 2 * B * S * T * H        # mix
             + 2 * B * S * 2 * H * H)   # output projection (two halves)
    transcendentals = B * S * T + B * S * H + B * S   # exp + tanh + reciprocal
    bytes_accessed = f32 * (B * S * H + B * T * H + 3 * H * H
                            + B * S * H + B * S * T)

    vmem = pl.BlockSpec(memory_space=pltpu.MemorySpace.VMEM)
    out, weights = pl.pallas_call(
        attention_kernel,
        out_shape=(jax.ShapeDtypeStruct((B, S, H), jnp.float32),
                   jax.ShapeDtypeStruct((B, S, T), jnp.float32)),
        in_specs=[vmem, vmem, vmem],
        out_specs=(vmem, vmem),
        cost_estimate=pl.CostEstimate(flops=flops,
                                      transcendentals=transcendentals,
                                      bytes_accessed=bytes_accessed),
        compiler_params=pltpu.CompilerParams(vmem_limit_bytes=32 * (1 << 20)),
    )(query, context, w_packed)
    return out, weights


# ------------------------- pure-JAX reference (for checking) ------------------
def attention_ref(query, context, w_lin_in, w_lin_out):
    qp = jnp.einsum('bsh,kh->bsk', query, w_lin_in)           # linear_in (no bias)
    scores = jnp.einsum('bsh,bth->bst', qp, context)
    w = jax.nn.softmax(scores, axis=-1)
    mix = jnp.einsum('bst,bth->bsh', w, context)
    combined = jnp.concatenate([mix, qp], axis=-1)            # (B, S, 2H)
    out = jnp.tanh(jnp.einsum('bsd,kd->bsk', combined, w_lin_out))
    return out, w


# --------------------------------- main ---------------------------------------
if __name__ == "__main__":
    B, S, T, H = 2, 8, 8, 32     # batch, output_len, query_len(context), dimensions

    key = jax.random.PRNGKey(0)
    kq, kc, k1, k2 = jax.random.split(key, 4)
    query = jax.random.normal(kq, (B, S, H), jnp.float32)
    context = jax.random.normal(kc, (B, T, H), jnp.float32)
    # PyTorch-style Linear weights (out_features, in_features), bias=False
    w_lin_in = jax.random.uniform(k1, (H, H), jnp.float32, -0.1, 0.1)
    w_lin_out = jax.random.uniform(k2, (H, 2 * H), jnp.float32, -0.1, 0.1)

    # one-time weight packing, outside the jitted hot path
    w_packed = prepare_weights(w_lin_in, w_lin_out)
    jax.block_until_ready(w_packed)

    attn_fn = jax.jit(attention)
    out, attn_w = attn_fn(query, context, w_packed)
    jax.block_until_ready((out, attn_w))

    # shape + numerical check against a pure-JAX reference of the PyTorch module
    assert out.shape == (B, S, H) and attn_w.shape == (B, S, T)
    ref_out, ref_w = attention_ref(query, context, w_lin_in, w_lin_out)
    assert jnp.allclose(out, ref_out, atol=1e-5, rtol=1e-5)
    assert jnp.allclose(attn_w, ref_w, atol=1e-6, rtol=1e-5)
    assert jnp.allclose(jnp.sum(attn_w, axis=-1), 1.0, atol=1e-5)

    print("KERNEL_OK")
</pallas_src>

<mosaic_0001>
module attributes {stable_mosaic.version = 11 : i64} {
  func.func @attention_kernel(%arg0: memref<2x8x32xf32, #tpu.memory_space<vmem>>, %arg1: memref<2x8x32xf32, #tpu.memory_space<vmem>>, %arg2: memref<3x32x32xf32, #tpu.memory_space<vmem>>, %arg3: memref<2x8x32xf32, #tpu.memory_space<vmem>>, %arg4: memref<2x8x8xf32, #tpu.memory_space<vmem>>) attributes {dimension_semantics = [], scalar_prefetch = 0 : i64, scratch_operands = 0 : i64, tpu.core_type = #tpu.core_type<tc>} {
    %c0 = arith.constant 0 : index
    %c0_0 = arith.constant 0 : index
    %c0_1 = arith.constant 0 : index
    %0 = vector.load %arg0[%c0, %c0_0, %c0_1] : memref<2x8x32xf32, #tpu.memory_space<vmem>>, vector<2x8x32xf32>
    %c0_2 = arith.constant 0 : index
    %c0_3 = arith.constant 0 : index
    %c0_4 = arith.constant 0 : index
    %1 = vector.load %arg1[%c0_2, %c0_3, %c0_4] : memref<2x8x32xf32, #tpu.memory_space<vmem>>, vector<2x8x32xf32>
    %c0_5 = arith.constant 0 : index
    %c0_6 = arith.constant 0 : index
    %c0_7 = arith.constant 0 : index
    %2 = vector.load %arg2[%c0_5, %c0_6, %c0_7] : memref<3x32x32xf32, #tpu.memory_space<vmem>>, vector<1x32x32xf32>
    %3 = vector.shape_cast %2 : vector<1x32x32xf32> to vector<32x32xf32>
    %cst = arith.constant dense<0.000000e+00> : vector<2x8x32xf32>
    %4 = tpu.matmul %0, %3, %cst {dimension_numbers = #tpu.dot_dimension_numbers<[2], [1], [0, 1], [0], [0, 0, 0, 1, 1, 0], [], []>} : vector<2x8x32xf32>, vector<32x32xf32>, vector<2x8x32xf32> -> vector<2x8x32xf32>
    "tpu.trace_start"() <{level = 10 : i32, message = "bsh,bth->bst"}> : () -> ()
    %cst_8 = arith.constant dense<0.000000e+00> : vector<2x8x8xf32>
    %5 = tpu.matmul %4, %1, %cst_8 {dimension_numbers = #tpu.dot_dimension_numbers<[2], [2], [1], [1], [0, 0, 0, 1, 1, 1], [0], [0]>} : vector<2x8x32xf32>, vector<2x8x32xf32>, vector<2x8x8xf32> -> vector<2x8x8xf32>
    "tpu.trace_stop"() : () -> ()
    %cst_9 = arith.constant dense<0xFF800000> : vector<2x8xf32>
    %6 = vector.multi_reduction <maximumf>, %5, %cst_9 [2] : vector<2x8x8xf32> to vector<2x8xf32>
    %7 = vector.shape_cast %6 : vector<2x8xf32> to vector<2x8x1xf32>
    %8 = vector.broadcast %7 : vector<2x8x1xf32> to vector<2x8x8xf32>
    %9 = arith.subf %5, %8 : vector<2x8x8xf32>
    %10 = math.exp %9 : vector<2x8x8xf32>
    %cst_10 = arith.constant dense<0.000000e+00> : vector<2x8xf32>
    %11 = vector.multi_reduction <add>, %10, %cst_10 [2] : vector<2x8x8xf32> to vector<2x8xf32>
    %12 = vector.shape_cast %11 : vector<2x8xf32> to vector<2x8x1xf32>
    %13 = tpu.reciprocal %12 : vector<2x8x1xf32> -> vector<2x8x1xf32>
    %14 = vector.broadcast %13 : vector<2x8x1xf32> to vector<2x8x8xf32>
    %15 = arith.mulf %10, %14 : vector<2x8x8xf32>
    %c0_11 = arith.constant 0 : index
    %c0_12 = arith.constant 0 : index
    %c0_13 = arith.constant 0 : index
    %16 = vector.load %arg4[%c0_11, %c0_12, %c0_13] : memref<2x8x8xf32, #tpu.memory_space<vmem>>, vector<2x8x8xf32>
    tpu.vector_store %arg4[%c0_11, %c0_12, %c0_13], %15 {strides = array<i32>} : memref<2x8x8xf32, #tpu.memory_space<vmem>>, vector<2x8x8xf32>,
    "tpu.trace_start"() <{level = 10 : i32, message = "bst,bth->bsh"}> : () -> ()
    %cst_14 = arith.constant dense<0.000000e+00> : vector<2x8x32xf32>
    %17 = tpu.matmul %15, %1, %cst_14 {dimension_numbers = #tpu.dot_dimension_numbers<[2], [1], [1], [2], [0, 0, 0, 1, 1, 2], [0], [0]>} : vector<2x8x8xf32>, vector<2x8x32xf32>, vector<2x8x32xf32> -> vector<2x8x32xf32>
    "tpu.trace_stop"() : () -> ()
    %c1 = arith.constant 1 : index
    %c0_15 = arith.constant 0 : index
    %c0_16 = arith.constant 0 : index
    %18 = vector.load %arg2[%c1, %c0_15, %c0_16] : memref<3x32x32xf32, #tpu.memory_space<vmem>>, vector<1x32x32xf32>
    %19 = vector.shape_cast %18 : vector<1x32x32xf32> to vector<32x32xf32>
    %cst_17 = arith.constant dense<0.000000e+00> : vector<2x8x32xf32>
    %20 = tpu.matmul %17, %19, %cst_17 {dimension_numbers = #tpu.dot_dimension_numbers<[2], [1], [0, 1], [0], [0, 0, 0, 1, 1, 0], [], []>} : vector<2x8x32xf32>, vector<32x32xf32>, vector<2x8x32xf32> -> vector<2x8x32xf32>
    %c2 = arith.constant 2 : index
    %c0_18 = arith.constant 0 : index
    %c0_19 = arith.constant 0 : index
    %21 = vector.load %arg2[%c2, %c0_18, %c0_19] : memref<3x32x32xf32, #tpu.memory_space<vmem>>, vector<1x32x32xf32>
    %22 = vector.shape_cast %21 : vector<1x32x32xf32> to vector<32x32xf32>
    %cst_20 = arith.constant dense<0.000000e+00> : vector<2x8x32xf32>
    %23 = tpu.matmul %4, %22, %cst_20 {dimension_numbers = #tpu.dot_dimension_numbers<[2], [1], [0, 1], [0], [0, 0, 0, 1, 1, 0], [], []>} : vector<2x8x32xf32>, vector<32x32xf32>, vector<2x8x32xf32> -> vector<2x8x32xf32>
    %24 = arith.addf %20, %23 : vector<2x8x32xf32>
    %25 = math.tanh %24 : vector<2x8x32xf32>
    %c0_21 = arith.constant 0 : index
    %c0_22 = arith.constant 0 : index
    %c0_23 = arith.constant 0 : index
    %26 = vector.load %arg3[%c0_21, %c0_22, %c0_23] : memref<2x8x32xf32, #tpu.memory_space<vmem>>, vector<2x8x32xf32>
    tpu.vector_store %arg3[%c0_21, %c0_22, %c0_23], %25 {strides = array<i32>} : memref<2x8x32xf32, #tpu.memory_space<vmem>>, vector<2x8x32xf32>,
    return
  }
}

</mosaic_0001>

<bundles_post_ra>
// kernel: attention.1
= control target key start
LH: loop header
LB: loop body
LE: loop exit
PB: predicated region body
PF: predicated region fallthrough
CT: control target
= control target key end

     0   :  { %10 = vsyncpa [#allocation3], 0  ;;  %s657_s0 = inlined_call_operand.hbm [shape: f32[2,8,32], index: 0, kind: input, shape index: {}]   ;;  %s658_s1 = inlined_call_operand.hbm [shape: f32[2,8,32], index: 1, kind: input, shape index: {}]   ;;  %s659_s2 = inlined_call_operand.hbm [shape: f32[3,32,32], index: 2, kind: input, shape index: {}]   ;;  %s660_s3 = inlined_call_operand.hbm [shape: f32[2,8,32], index: 3, kind: output, shape index: {0}]   ;;  %s661_s4 = inlined_call_operand.hbm [shape: f32[2,8,8], index: 4, kind: output, shape index: {1}]  }
   0x1   :  { %11 = vsyncpa [#allocation6], 0 }
   0x2   :  { %12 = vsyncpa [#allocation4], 0 }
   0x3   :  { %13 = vsyncpa [#allocation10], 0  ;;  %s31_s17 = sshll.u32 %s658_s1, 4  ;;  %s563_s18 = smov [#allocation5]   ;;  %s32_s17 = int_to_ptr.hbm [resolvable:$true] %s31_s17 }
   0x4   :  { %s33_s19 = sshll.u32 %s563_s18, 4  ;;  %s18_s22 = sshll.u32 %s657_s0, 4  ;;  %s34_s19 = int_to_ptr.vmem [resolvable:$true] %s33_s19  ;;  %s19_s22 = int_to_ptr.hbm [resolvable:$true] %s18_s22 }
   0x5   :  { %s564_s23 = smov 128   ;;  %s565_s24 = smov 8  }
   0x6   :  { %39 = dma.hbm_to_vmem [thread:$0]  %s32_s17, 256, %s34_s19, [#allocation6], %s564_s23, %s564_s23, %s565_s24  }
   0x7   :  { %s566_s25 = smov [#allocation2]   ;;  %s44_s1 = sshll.u32 %s659_s2, 4  ;;  %s45_s1 = int_to_ptr.hbm [resolvable:$true] %s44_s1 }
   0x8   :  { %s20_s26 = sshll.u32 %s566_s25, 4  ;;  %s567_s0 = smov [#allocation7]   ;;  %s21_s26 = int_to_ptr.vmem [resolvable:$true] %s20_s26 }
   0x9   :  { %26 = dma.hbm_to_vmem [thread:$0]  %s19_s22, 256, %s21_s26, [#allocation3], %s564_s23, %s564_s23, %s565_s24  }
   0xa   :  { %s46_s29 = sshll.u32 %s567_s0, 4  ;;  %s47_s29 = int_to_ptr.vmem [resolvable:$true] %s46_s29 }
   0xb   :  { %52 = dma.hbm_to_vmem [thread:$0]  %s45_s1, 1536, %s47_s29, [#allocation6], %s564_s23, %s564_s23, %s565_s24  }
   0xc   :  { %555 = dma.done.wait [#allocation3], 256  }
   0xd   :  { %556 = vsyncadd [#allocation3], 4294967040 }
   0xe   :  { %557 = dma.done.wait [#allocation6], 1792  }
   0xf   :  { %558 = vsyncadd [#allocation6], 4294965504  ;;  %vm73_vm0 = vcmask 261120   ;;  %v72_v0 = vld [vmem:[#allocation7 + $0x18] sm:$0xff]  ;;  %v71_v1 = vld [vmem:[#allocation7 + $0x10] sm:$0xff]  ;;  %vm167_vm1 = vcmask 64512  }
  0x10   :  { %392 = vmatpush.xpose.msk.msra.mxu0 %vm73_vm0, %v72_v0  ;;  %v273_v2 = vld [vmem:[#allocation7 + $0x58] sm:$0xff]  ;;  %v67_v3 = vld [vmem:[#allocation5] sm:$0xff]  ;;  %v70_v5 = vld [vmem:[#allocation7 + $0x8] sm:$0xff]  ;;  %s568_s2 = smov [#allocation9]   ;;  %s373_s7 = sshll.u32 %s661_s4, 4  ;;  %s374_s7 = int_to_ptr.hbm [resolvable:$true] %s373_s7 }
  0x11   :  { %404 = vmatpush.xpose.msk.msra.mxu1 %vm73_vm0, %v273_v2  ;;  %v272_v4 = vld [vmem:[#allocation7 + $0x50] sm:$0xff]  ;;  %398 = vmatpush.xpose.msk.msra.mxu3 %vm73_vm0, %v67_v3  ;;  %v271_v6 = vld [vmem:[#allocation7 + $0x48] sm:$0xff]  ;;  %v69_v7 = vld [vmem:[#allocation7] sm:$0xff]  ;;  %s371_s30 = sshll.u32 %s568_s2, 4  ;;  %s569_s8 = smov [#allocation8]   ;;  %s372_s30 = int_to_ptr.vmem [resolvable:$true] %s371_s30 }
  0x12   :  { %v270_v8 = vld [vmem:[#allocation7 + $0x40] sm:$0xff]  ;;  %v66_v10 = vld [vmem:[#allocation2 + $0x8] sm:$0xff]  ;;  %v68_v11 = vld [vmem:[#allocation5 + $0x8] sm:$0xff]  ;;  %s358_s9 = sshll.u32 %s569_s8, 4  ;;  %s360_s11 = sshll.u32 %s660_s3, 4  ;;  %s359_s9 = int_to_ptr.vmem [resolvable:$true] %s358_s9  ;;  %s361_s11 = int_to_ptr.hbm [resolvable:$true] %s360_s11 }
  0x13   :  { %v65_v9 = vld [vmem:[#allocation2] sm:$0xff]  ;;  %400 = vmatpush.xpose.msk.msra.mxu2 %vm73_vm0, %v68_v11  ;;  %v268_v28 = vld [vmem:[#allocation7 + $0x38] sm:$0xff]  ;;  %v267_v29 = vld [vmem:[#allocation7 + $0x30] sm:$0xff] }
  0x14   :  { %393 = vmatpush.xpose.msk.msra.mxu0 %vm73_vm0, %v71_v1  ;;  %v266_v31 = vld [vmem:[#allocation7 + $0x28] sm:$0xff]  ;;  %v265_v32 = vld [vmem:[#allocation7 + $0x20] sm:$0xff] }
  0x15   :  { %236 = vmatpush.msrb.mxu3 %v67_v3  ;;  %405 = vmatpush.xpose.msk.msra.mxu1 %vm73_vm0, %v272_v4 }
  0x17   :  { %410 = vmatpush.xpose.msk.msrb.mxu2 %vm73_vm0, %v268_v28 }
  0x18   :  { %394 = vmatpush.xpose.msk.msra.mxu0 %vm73_vm0, %v70_v5 }
  0x19   :  { %406 = vmatpush.xpose.msk.msra.mxu1 %vm73_vm0, %v271_v6 }
  0x1b   :  { %411 = vmatpush.xpose.msk.msrb.mxu2 %vm73_vm0, %v267_v29 }
  0x1c   :  { %395 = vmatpush.xpose.msk.msra.mxu0 %vm73_vm0, %v69_v7 }
  0x1d   :  { %407 = vmatpush.xpose.msk.msra.mxu1 %vm73_vm0, %v270_v8 }
  0x1f   :  { %396 = vmatmul.msk.f32.vlgmr.msra.gmra.mxu0 %vm73_vm0, %v65_v9  ;;  %412 = vmatpush.xpose.msk.msrb.mxu2 %vm73_vm0, %v266_v31 }
  0x23   :  { %413 = vmatpush.xpose.msk.msrb.mxu2 %vm73_vm0, %v265_v32 }
  0x27   :  { %397 = vmatmul.msk.f32.gmra.mxu0 %vm73_vm0, %v66_v10 }
  0x9c   :  { %v109_v12 = vpop.f32.mrf.mxu0 }
  0x9d   :  { %399 = vmatmul.msk.f32.vlgmr.msra.gmra.mxu3 %vm73_vm0, %v109_v12  ;;  %408 = vmatmul.msk.f32.vlgmr.msra.gmra.mxu1 %vm73_vm0, %v109_v12 }
  0x9e   :  { %259 = vmatpush.msra.mxu3 %v68_v11 }
  0xa4   :  { %v112_v13 = vpop.f32.mrf.mxu0 }
  0xa5   :  { %401 = vmatmul.msk.f32.vlgmr.msra.gmra.mxu2 %vm73_vm0, %v112_v13  ;;  %409 = vmatmul.msk.f32.gmra.mxu1 %vm73_vm0, %v112_v13 }
 0x11a   :  { %v303_v58 = vpop.f32.mrf.mxu1 }
 0x120   :  { %v138_v14 = vpop.f32.mrf.mxu3 }
 0x121   :  { %v168_v15 = vsel %vm167_vm1, %v138_v14, -inf }
 0x122   :  { %169 = vmax.xlane.f32.xlu0 %v168_v15  ;;  %v306_v61 = vpop.f32.mrf.mxu1 }
 0x128   :  { %v164_v16 = vpop.f32.mrf.mxu2 }
 0x129   :  { %v171_v17 = vsel %vm167_vm1, %v164_v16, -inf }
 0x12a   :  { %172 = vmax.xlane.f32.xlu0 %v171_v17 }
 0x195   :  { %v170_v18 = vpop.xlane.xlu0 %169 }
 0x196   :  { %v174_v19 = vsub.f32 %v138_v14, %v170_v18 }
 0x198   :  { %v176_v20 = vmul.f32 1.442695, %v174_v19 }
 0x19a   :  { %423 = vpow2.f32 %v176_v20 }
 0x19d   :  { %v173_v21 = vpop.xlane.xlu0 %172 }
 0x19e   :  { %v175_v22 = vsub.f32 %v164_v16, %v173_v21 }
 0x1a0   :  { %v424_v23 = vpop.eup %423  ;;  %v178_v24 = vmul.f32 1.442695, %v175_v22 }
 0x1a1   :  { %v180_v25 = vsel %vm167_vm1, %v424_v23, 0.0 }
 0x1a2   :  { %425 = vpow2.f32 %v178_v24  ;;  %181 = vadd.xlane.f32.xlu1 %v180_v25 }
 0x1a8   :  { %v426_v26 = vpop.eup %425 }
 0x1a9   :  { %v183_v27 = vsel %vm167_vm1, %v426_v26, 0.0 }
 0x1aa   :  { %184 = vadd.xlane.f32.xlu1 %v183_v27 }
 0x215   :  { %v182_v30 = vpop.xlane.xlu1 %181 }
 0x216   :  { %427 = vrcp.f32 %v182_v30  ;;  %v197_v37 = vand.u32 2147483648, %v182_v30  ;;  %v195_v39 = vand.u32 2147483647, %v182_v30  ;;  %vm191_vm3 = vweird.f32 %v182_v30 }
 0x218   :  { %v198_v42 = vor.u32 1.1754944e-38, %v197_v37  ;;  %vm196_vm5 = vcmp.eq.f32.partialorder %v195_v39, 8.507059e+37 }
 0x21c   :  { %v428_v33 = vpop.eup %427 }
 0x21d   :  { %v187_v34 = vmul.f32 %v428_v33, %v182_v30  ;;  %v185_v35 = vpop.xlane.xlu1 %184  ;;  %vm192_vm2 = vweird.f32 %v428_v33 }
 0x21e   :  { %429 = vrcp.f32 %v185_v35  ;;  %vm193_vm4 = vmor %vm191_vm3, %vm192_vm2  ;;  %v211_v48 = vand.u32 2147483648, %v185_v35  ;;  %v209_v50 = vand.u32 2147483647, %v185_v35  ;;  %vm205_vm7 = vweird.f32 %v185_v35 }
 0x21f   :  { %v188_v36 = vsub.f32 1.0, %v187_v34 }
 0x220   :  { %v212_v52 = vor.u32 1.1754944e-38, %v211_v48  ;;  %vm210_vm9 = vcmp.eq.f32.partialorder %v209_v50, 8.507059e+37 }
 0x221   :  { %v189_v38 = vmul.f32 %v428_v33, %v188_v36 }
 0x223   :  { %v190_v40 = vadd.f32 %v428_v33, %v189_v38 }
 0x224   :  { %v430_v41 = vpop.eup %429 }
 0x225   :  { %v201_v43 = vmul.f32 %v430_v41, %v185_v35  ;;  %v194_v44 = vsel %vm193_vm4, %v428_v33, %v190_v40  ;;  %vm206_vm6 = vweird.f32 %v430_v41 }
 0x226   :  { %v199_v45 = vsel %vm196_vm5, %v198_v42, %v194_v44  ;;  %vm207_vm8 = vmor %vm205_vm7, %vm206_vm6 }
 0x227   :  { %v202_v46 = vsub.f32 1.0, %v201_v43  ;;  %v214_v47 = vmul.f32 %v424_v23, %v199_v45 }
 0x229   :  { %v203_v49 = vmul.f32 %v430_v41, %v202_v46  ;;  %402 = vmatmul.msk.f32.vlgmr.msrb.gmra.mxu3 %vm167_vm1, %v214_v47  ;;  %216 = vst.msk [vmem:[#allocation9] sm:$0xff] %vm167_vm1, %v214_v47 }
 0x22b   :  { %v204_v51 = vadd.f32 %v430_v41, %v203_v49 }
 0x22d   :  { %v208_v53 = vsel %vm207_vm8, %v430_v41, %v204_v51 }
 0x22e   :  { %v213_v54 = vsel %vm210_vm9, %v212_v52, %v208_v53 }
 0x22f   :  { %v215_v55 = vmul.f32 %v426_v26, %v213_v54 }
 0x231   :  { %217 = vst.msk [vmem:[#allocation9 + $0x8] sm:$0xff] %vm167_vm1, %v215_v55  ;;  %403 = vmatmul.msk.f32.vlgmr.msra.gmra.mxu3 %vm167_vm1, %v215_v55 }
 0x232   :  { %379 = dma.vmem_to_hbm [thread:$0]  %s372_s30, 256, %s374_s7, [#allocation10], %s564_s23, %s564_s23, %s565_s24  }
 0x2ac   :  { %v238_v56 = vpop.f32.mrf.mxu3 }
 0x2ad   :  { %414 = vmatmul.msk.f32.vlgmr.msrb.gmra.mxu2 %vm73_vm0, %v238_v56 }
 0x2b4   :  { %v261_v57 = vpop.f32.mrf.mxu3 }
 0x2b5   :  { %415 = vmatmul.msk.f32.gmra.mxu2 %vm73_vm0, %v261_v57 }
 0x330   :  { %v344_v59 = vpop.f32.mrf.mxu2 }
 0x331   :  { %v345_v60 = vadd.f32 %v344_v59, %v303_v58 }
 0x333   :  { %431 = vtanh.f32 %v345_v60 }
 0x338   :  { %v347_v62 = vpop.f32.mrf.mxu2 }
 0x339   :  { %v432_v63 = vpop.eup %431  ;;  %v348_v0 = vadd.f32 %v347_v62, %v306_v61 }
 0x33a   :  { %352 = vst.msk [vmem:[#allocation8] sm:$0xff] %vm73_vm0, %v432_v63 }
 0x33b   :  { %433 = vtanh.f32 %v348_v0 }
 0x341   :  { %v434_v1 = vpop.eup %433 }
 0x342   :  { %353 = vst.msk [vmem:[#allocation8 + $0x8] sm:$0xff] %vm73_vm0, %v434_v1 }
 0x343   :  { %366 = dma.vmem_to_hbm [thread:$0]  %s359_s9, 256, %s361_s11, [#allocation4], %s564_s23, %s564_s23, %s565_s24  }
 0x344   :  { %559 = dma.done.wait [#allocation4], 256  }
 0x345   :  { %560 = vsyncadd [#allocation4], 4294967040 }
 0x346   :  { %561 = dma.done.wait [#allocation10], 256  }
 0x347   :  { %562 = vsyncadd [#allocation10], 4294967040 }
 0x348   :  { %388 = vsyncpa [#allocation3], 1 }
 0x349   :  { %389 = vsyncpa [#allocation6], 1 }
 0x34a   :  { %390 = vsyncpa [#allocation4], 1 }
 0x34b   :  { %391 = vsyncpa [#allocation10], 1 }

</bundles_post_ra>
